<compile_context>
chip_gen: v6e
topology: v6e:2x2x1
jax: 0.10.0
libtpu: 0.0.40
codegen_flags: <defaults>
</compile_context>

<pallas_src>
import functools

import jax
import jax.numpy as jnp
import numpy as np
from jax.experimental import pallas as pl
from jax.experimental.pallas import tpu as pltpu


def _sigma(x, nonlinear):
    # Static (trace-time) choice of nonlinearity, matching Elman.__init__.
    if nonlinear == "relu":
        return jnp.maximum(x, 0.0)
    if nonlinear == "tanh":
        return jnp.tanh(x)
    if nonlinear == "relu-tanh":
        return jnp.maximum(jnp.tanh(x), 0.0)
    raise ValueError(f"unknown nonlinear: {nonlinear}")


# --------------- single-step kernels (no grid, no pipeline overhead) ---------------

def _step_kernel_alpha1(au_ref, w_full_ref, b_ref, w_out_ref, r_ref, y_ref, *, nonlinear):
    # pre = [a, u] @ [W_in; W] + b   -> one MXU op instead of two
    pre = jnp.dot(au_ref[...], w_full_ref[...],
                  preferred_element_type=jnp.float32) + b_ref[...]
    r = _sigma(pre, nonlinear)
    r_ref[...] = r                      # alpha == 1.0  =>  u_new == r (wrapper duplicates)
    y_ref[...] = jnp.dot(r, w_out_ref[...], preferred_element_type=jnp.float32)


def _step_kernel_leaky(au_ref, u_ref, w_full_ref, b_ref, w_out_ref,
                       r_ref, u_new_ref, y_ref, *, alpha, nonlinear):
    pre = jnp.dot(au_ref[...], w_full_ref[...],
                  preferred_element_type=jnp.float32) + b_ref[...]
    r = _sigma(pre, nonlinear)
    r_ref[...] = r
    u_new_ref[...] = (1.0 - alpha) * u_ref[...] + alpha * r
    y_ref[...] = jnp.dot(r, w_out_ref[...], preferred_element_type=jnp.float32)


def rnn_readout_forward(a, u, w_full, b, w_out_t, *, alpha=1.0, nonlinear="relu"):
    """One fused Elman step + readout. Returns (r, u_new, y).

    w_full  = concat([W_in, W], axis=0), shape (in_size + N, N).
    w_out_t = W_out.weight.T, shape (N, out_size); bias_out=False.
    """
    B = a.shape[0]
    N = u.shape[1]
    out_size = w_out_t.shape[1]
    au = jnp.concatenate([a, u], axis=-1)          # (B, in_size + N), fused matmul input
    b2 = b.reshape(1, N)                           # broadcast bias over batch

    vmem = pl.BlockSpec(memory_space=pltpu.MemorySpace.VMEM)

    if alpha == 1.0:
        # Static specialization: u_new == r, skip the leaky FMA and the extra output.
        r, y = pl.pallas_call(
            functools.partial(_step_kernel_alpha1, nonlinear=nonlinear),
            out_shape=(jax.ShapeDtypeStruct((B, N), jnp.float32),
                       jax.ShapeDtypeStruct((B, out_size), jnp.float32)),
            in_specs=[vmem, vmem, vmem, vmem],
            out_specs=(vmem, vmem),
        )(au, w_full, b2, w_out_t)
        return r, r, y

    r, u_new, y = pl.pallas_call(
        functools.partial(_step_kernel_leaky, alpha=alpha, nonlinear=nonlinear),
        out_shape=(jax.ShapeDtypeStruct((B, N), jnp.float32),
                   jax.ShapeDtypeStruct((B, N), jnp.float32),
                   jax.ShapeDtypeStruct((B, out_size), jnp.float32)),
        in_specs=[vmem, vmem, vmem, vmem, vmem],
        out_specs=(vmem, vmem, vmem),
    )(au, u, w_full, b2, w_out_t)
    return r, u_new, y


# --------------- T-step rollout kernel (recurrence internalized) ---------------

def _rollout_kernel(a_ref, u0_ref, w_in_ref, w_ref, b_ref, w_out_ref,
                    r_seq_ref, y_seq_ref, u_final_ref, u_sc, *, alpha, nonlinear):
    t = pl.program_id(0)

    @pl.when(t == 0)
    def _():
        u_sc[...] = u0_ref[...]           # load initial hidden state into the carry

    a_t = a_ref[0]                        # (B, in_size), this timestep's input
    u = u_sc[...]                         # (B, N), carried hidden state
    h = jnp.dot(a_t, w_in_ref[...], preferred_element_type=jnp.float32)
    pre = jnp.dot(u, w_ref[...], preferred_element_type=jnp.float32) + b_ref[...] + h
    r = _sigma(pre, nonlinear)
    r_seq_ref[0] = r
    y_seq_ref[0] = jnp.dot(r, w_out_ref[...], preferred_element_type=jnp.float32)

    if alpha == 1.0:                      # static specialization
        u_new = r
    else:
        u_new = (1.0 - alpha) * u + alpha * r
    u_sc[...] = u_new

    @pl.when(t == pl.num_programs(0) - 1)
    def _():
        u_final_ref[...] = u_new


def rnn_readout_rollout(a_seq, u0, w_in, w, b, w_out_t, *, alpha=1.0, nonlinear="relu"):
    """Run T Elman steps + readouts inside one kernel. Returns (r_seq, y_seq, u_final)."""
    T, B, in_size = a_seq.shape
    N = u0.shape[1]
    out_size = w_out_t.shape[1]
    b2 = b.reshape(1, N)

    grid_spec = pltpu.PrefetchScalarGridSpec(
        num_scalar_prefetch=0,
        grid=(T,),
        in_specs=[
            pl.BlockSpec((1, B, in_size), lambda t: (t, 0, 0)),   # a_t streamed per step
            pl.BlockSpec((B, N), lambda t: (0, 0)),               # u0 (read at t == 0)
            pl.BlockSpec((in_size, N), lambda t: (0, 0)),         # W_in, resident
            pl.BlockSpec((N, N), lambda t: (0, 0)),               # W, resident
            pl.BlockSpec((1, N), lambda t: (0, 0)),               # b, resident
            pl.BlockSpec((N, out_size), lambda t: (0, 0)),        # W_out^T, resident
        ],
        out_specs=(
            pl.BlockSpec((1, B, N), lambda t: (t, 0, 0)),         # r per step
            pl.BlockSpec((1, B, out_size), lambda t: (t, 0, 0)),  # y per step
            pl.BlockSpec((B, N), lambda t: (0, 0)),               # final hidden state
        ),
        scratch_shapes=[pltpu.VMEM((B, N), jnp.float32)],         # carried hidden state
    )

    r_seq, y_seq, u_final = pl.pallas_call(
        functools.partial(_rollout_kernel, alpha=alpha, nonlinear=nonlinear),
        grid_spec=grid_spec,
        out_shape=(
            jax.ShapeDtypeStruct((T, B, N), jnp.float32),
            jax.ShapeDtypeStruct((T, B, out_size), jnp.float32),
            jax.ShapeDtypeStruct((B, N), jnp.float32),
        ),
        compiler_params=pltpu.CompilerParams(dimension_semantics=("arbitrary",)),
    )(a_seq, u0, w_in, w, b2, w_out_t)
    return r_seq, y_seq, u_final


def _xavier_uniform(key, shape):
    fan_in, fan_out = shape
    bound = float(np.sqrt(6.0 / (fan_in + fan_out)))
    return jax.random.uniform(key, shape, jnp.float32, -bound, bound)


if __name__ == "__main__":
    B, init_size, in_size, N, out_size, T = 2, 16, 8, 32, 4, 8
    alpha = 1.0

    key = jax.random.PRNGKey(0)
    k_w, k_win, k_wout, k_winit, k_s0, k_a, k_aseq = jax.random.split(key, 7)

    # Elman parameters
    W = _xavier_uniform(k_w, (N, N))                 # recurrent weight
    b = jnp.zeros((N,), jnp.float32)                 # recurrent bias (zeros_)
    W_in = _xavier_uniform(k_win, (in_size, N))      # input weight
    # Readout / init linear layers (nn.Linear weight is (out, in); keep transposed form)
    W_out_t = _xavier_uniform(k_wout, (N, out_size))         # = W_out.weight.T
    W_init_t = _xavier_uniform(k_winit, (init_size, N))      # = W_init.weight.T
    # Fused pre-activation weight for the single-step kernel (built once, host-side)
    W_full = jnp.concatenate([W_in, W], axis=0)              # (in_size + N, N)

    # Inputs
    s0 = jax.random.normal(k_s0, (B, init_size), jnp.float32)
    a = jax.random.normal(k_a, (B, in_size), jnp.float32)
    a_seq = jax.random.normal(k_aseq, (T, B, in_size), jnp.float32)

    # RNNReadout.init with init_weight=True: u0 = W_init(s0)
    u0 = s0 @ W_init_t
    # TODO(synk): init_weight=False branch uses `self.W_out.W`, which does not exist on
    # nn.Linear in the reference code; only the W_init path is implemented.

    # ---- single fused step (module.forward semantics, alpha == 1.0 fast path) ----
    r, u_new, y = rnn_readout_forward(a, u0, W_full, b, W_out_t, alpha=alpha)
    jax.block_until_ready((r, u_new, y))

    h_ref = a @ W_in
    r_ref = jnp.maximum(u0 @ W + b + h_ref, 0.0)
    u_ref = (1.0 - alpha) * u0 + alpha * r_ref
    y_ref = r_ref @ W_out_t
    np.testing.assert_allclose(np.asarray(r), np.asarray(r_ref), rtol=1e-4, atol=1e-4)
    np.testing.assert_allclose(np.asarray(u_new), np.asarray(u_ref), rtol=1e-4, atol=1e-4)
    np.testing.assert_allclose(np.asarray(y), np.asarray(y_ref), rtol=1e-4, atol=1e-4)

    # ---- general leaky path (alpha != 1.0) ----
    alpha2 = 0.5
    r2, u2, y2 = rnn_readout_forward(a, u0, W_full, b, W_out_t, alpha=alpha2)
    jax.block_until_ready((r2, u2, y2))
    u2_ref = (1.0 - alpha2) * u0 + alpha2 * r_ref
    np.testing.assert_allclose(np.asarray(r2), np.asarray(r_ref), rtol=1e-4, atol=1e-4)
    np.testing.assert_allclose(np.asarray(u2), np.asarray(u2_ref), rtol=1e-4, atol=1e-4)
    np.testing.assert_allclose(np.asarray(y2), np.asarray(y_ref), rtol=1e-4, atol=1e-4)

    # ---- T-step rollout: whole recurrence inside one kernel ----
    r_seq, y_seq, u_fin = rnn_readout_rollout(a_seq, u0, W_in, W, b, W_out_t, alpha=alpha)
    jax.block_until_ready((r_seq, y_seq, u_fin))

    def ref_step(u, a_t):
        h_t = a_t @ W_in
        r_t = jnp.maximum(u @ W + b + h_t, 0.0)
        u_n = (1.0 - alpha) * u + alpha * r_t
        y_t = r_t @ W_out_t
        return u_n, (r_t, y_t)

    u_fin_ref, (r_seq_ref, y_seq_ref) = jax.lax.scan(ref_step, u0, a_seq)
    np.testing.assert_allclose(np.asarray(r_seq), np.asarray(r_seq_ref), rtol=1e-4, atol=1e-4)
    np.testing.assert_allclose(np.asarray(y_seq), np.asarray(y_seq_ref), rtol=1e-4, atol=1e-4)
    np.testing.assert_allclose(np.asarray(u_fin), np.asarray(u_fin_ref), rtol=1e-4, atol=1e-4)

    print("KERNEL_OK")
</pallas_src>

<mosaic_0001>
module attributes {stable_mosaic.version = 11 : i64} {
  func.func @_step_kernel_alpha1(%arg0: memref<2x40xf32, #tpu.memory_space<vmem>>, %arg1: memref<40x32xf32, #tpu.memory_space<vmem>>, %arg2: memref<1x32xf32, #tpu.memory_space<vmem>>, %arg3: memref<32x4xf32, #tpu.memory_space<vmem>>, %arg4: memref<2x32xf32, #tpu.memory_space<vmem>>, %arg5: memref<2x4xf32, #tpu.memory_space<vmem>>) attributes {dimension_semantics = [], scalar_prefetch = 0 : i64, scratch_operands = 0 : i64, tpu.core_type = #tpu.core_type<tc>} {
    %c0 = arith.constant 0 : index
    %c0_0 = arith.constant 0 : index
    %0 = vector.load %arg0[%c0, %c0_0] : memref<2x40xf32, #tpu.memory_space<vmem>>, vector<2x40xf32>
    %c0_1 = arith.constant 0 : index
    %c0_2 = arith.constant 0 : index
    %1 = vector.load %arg1[%c0_1, %c0_2] : memref<40x32xf32, #tpu.memory_space<vmem>>, vector<40x32xf32>
    %cst = arith.constant dense<0.000000e+00> : vector<2x32xf32>
    %2 = tpu.matmul %0, %1, %cst {dimension_numbers = #tpu.dot_dimension_numbers<[1], [0], [0], [1], [0, 0, 1, 1], [], []>} : vector<2x40xf32>, vector<40x32xf32>, vector<2x32xf32> -> vector<2x32xf32>
    %c0_3 = arith.constant 0 : index
    %c0_4 = arith.constant 0 : index
    %3 = vector.load %arg2[%c0_3, %c0_4] : memref<1x32xf32, #tpu.memory_space<vmem>>, vector<1x32xf32>
    %4 = vector.broadcast %3 : vector<1x32xf32> to vector<2x32xf32>
    %5 = arith.addf %2, %4 : vector<2x32xf32>
    %cst_5 = arith.constant 0.000000e+00 : f32
    %6 = vector.broadcast %cst_5 : f32 to vector<2x32xf32>
    %7 = arith.maximumf %5, %6 : vector<2x32xf32>
    %c0_6 = arith.constant 0 : index
    %c0_7 = arith.constant 0 : index
    %8 = vector.load %arg4[%c0_6, %c0_7] : memref<2x32xf32, #tpu.memory_space<vmem>>, vector<2x32xf32>
    tpu.vector_store %arg4[%c0_6, %c0_7], %7 {strides = array<i32>} : memref<2x32xf32, #tpu.memory_space<vmem>>, vector<2x32xf32>,
    %c0_8 = arith.constant 0 : index
    %c0_9 = arith.constant 0 : index
    %9 = vector.load %arg3[%c0_8, %c0_9] : memref<32x4xf32, #tpu.memory_space<vmem>>, vector<32x4xf32>
    %cst_10 = arith.constant dense<0.000000e+00> : vector<2x4xf32>
    %10 = tpu.matmul %7, %9, %cst_10 {dimension_numbers = #tpu.dot_dimension_numbers<[1], [0], [0], [1], [0, 0, 1, 1], [], []>} : vector<2x32xf32>, vector<32x4xf32>, vector<2x4xf32> -> vector<2x4xf32>
    %c0_11 = arith.constant 0 : index
    %c0_12 = arith.constant 0 : index
    %11 = vector.load %arg5[%c0_11, %c0_12] : memref<2x4xf32, #tpu.memory_space<vmem>>, vector<2x4xf32>
    tpu.vector_store %arg5[%c0_11, %c0_12], %10 {strides = array<i32>} : memref<2x4xf32, #tpu.memory_space<vmem>>, vector<2x4xf32>,
    return
  }
}

</mosaic_0001>

<bundles_post_ra>
// kernel: tpu_custom_call.1
= control target key start
LH: loop header
LB: loop body
LE: loop exit
PB: predicated region body
PF: predicated region fallthrough
CT: control target
= control target key end

     0   :  { %11 = vsyncpa [#allocation3], 0  ;;  %v305_v1 = vmov 0.0   ;;  %vm306_vm0 = vmmov 0   ;;  %s378_s0 = inlined_call_operand.vmem [shape: f32[2,40], index: 0, kind: input, shape index: {}]   ;;  %s379_s1 = inlined_call_operand.vmem [shape: f32[40,32], index: 1, kind: input, shape index: {}]   ;;  %s380_s2 = inlined_call_operand.vmem [shape: f32[1,32], index: 2, kind: input, shape index: {}]   ;;  %s381_s3 = inlined_call_operand.vmem [shape: f32[32,4], index: 3, kind: input, shape index: {}]   ;;  %s382_s4 = inlined_call_operand.hbm [shape: f32[2,32], index: 4, kind: output, shape index: {0}]   ;;  %s383_s5 = inlined_call_operand.hbm [shape: f32[2,4], index: 5, kind: output, shape index: {1}]  }
   0x1   :  { %v26_v0 = vld [vmem:[%s379_s1 + $0x20] sm:$0xff]  ;;  %233 = vmatprep.subr.mxu0 %v305_v1  ;;  %v25_v2 = vld [vmem:[%s379_s1 + $0x18] sm:$0xff]  ;;  %243 = vmatprep.mubr.msk.f32.mxu0 %vm306_vm0, %v305_v1 }
   0x2   :  { %234 = vmatpush3.msra.mxu0 %v26_v0  ;;  %246 = vmatprep.subr.mxu1 %v305_v1  ;;  %v114_v3 = vld [vmem:[%s381_s3 + $0x18] sm:$0xff] }
   0x3   :  { %12 = vsyncpa [#allocation5], 0  ;;  %235 = vmatprep.subr.mxu0 %v305_v1  ;;  %v24_v4 = vld [vmem:[%s379_s1 + $0x10] sm:$0xff]  ;;  %247 = vmatpush3.msra.mxu1 %v114_v3  ;;  %v23_v5 = vld [vmem:[%s379_s1 + $0x8] sm:$0xff]  ;;  %vm34_vm1 = vcmask 326656   ;;  %vm115_vm2 = vcmask 261120  }
   0x4   :  { %236 = vmatpush3.msra.mxu0 %v25_v2  ;;  %248 = vmatprep.subr.mxu1 %v305_v1  ;;  %v22_v6 = vld [vmem:[%s379_s1] sm:$0xff]  ;;  %v113_v8 = vld [vmem:[%s381_s3 + $0x10] sm:$0xff]  ;;  %v112_v9 = vld [vmem:[%s381_s3 + $0x8] sm:$0xff]  ;;  %vm109_vm3 = vcmask 254976   ;;  %s307_s13 = smov [#allocation2]  }
   0x5   :  { %237 = vmatprep.subr.mxu0 %v305_v1  ;;  %254 = vmatprep.mubr.msk.f32.mxu1 %vm306_vm0, %v305_v1  ;;  %v21_v7 = vld [vmem:[%s378_s0] sm:$0x3]  ;;  %s197_s14 = sshll.u32 %s307_s13, 4  ;;  %s198_s14 = int_to_ptr.vmem [resolvable:$true] %s197_s14 }
   0x6   :  { %238 = vmatpush3.msra.mxu0 %v24_v4  ;;  %249 = vmatpush3.msra.mxu1 %v113_v8  ;;  %v111_v10 = vld [vmem:[%s381_s3] sm:$0xff]  ;;  %s261_s15 = scalar_lea.vmem %s198_s14, 32  ;;  %p266_p1 = scmp.lt.s32.totalorder %s198_s14, %s198_s14 }
   0x7   :  { %239 = vmatprep.subr.mxu0 %v305_v1  ;;  %250 = vmatprep.subr.mxu1 %v305_v1  ;;  %v219_v11 = vld [vmem:[%s380_s2] ss:$0 sm:$0xff]  ;;  %p262_p0 = scmp.ne.s32.totalorder %s198_s14, %s261_s15  ;;  %p267_p2 = scmp.lt.s32.totalorder %s261_s15, %s261_s15 }
   0x8   :  { %240 = vmatpush3.msra.mxu0 %v23_v5  ;;  %251 = vmatpush3.msra.mxu1 %v112_v9 }
   0x9   :  { %241 = vmatprep.subr.mxu0 %v305_v1  ;;  %252 = vmatprep.subr.mxu1 %v305_v1  ;;  %p268_p3 = por %p267_p2, %p266_p1 }
   0xa   :  { %242 = vmatpush3.msra.mxu0 %v22_v6  ;;  %253 = vmatpush3.msra.mxu1 %v111_v10 }
   0xb   :  { %244 = vmatmul.mubr.msk.f32.vlgmr.msra.gmra.mxu0 %vm34_vm1, %v21_v7  ;;  %p269_p4 = pnand %p268_p3, %p262_p0 }
  0xcb   :  { %v104_v12 = vpop.f32.mrf.mxu0 }
  0xcc   :  { %v105_v13 = vadd.f32 %v219_v11, %v104_v12 }
  0xcd   :  { %v245_v14 = vpop.f32.mrf.mxu0 }
  0xce   :  { %v108_v15 = vmax.f32 %v105_v13, 0.0 }
  0xd0   :  { %255 = vmatmul.mubr.msk.f32.vlgmr.msra.gmra.mxu1 %vm115_vm2, %v108_v15  ;;  %110 = vst.msk [vmem:[#allocation2] sm:$0x3] %vm109_vm3, %v108_v15 }
  0xd1   :  { %272 = shalt.err (!%p269_p4)
}
  0xd2   :  { %200 = dma.vmem_to_hbm [thread:$0]  %s198_s14, 32, %s382_s4, [#allocation3]   ;;  %vm189_vm4 = vcmask 25600  }
  0xd3   :  { %s308_s16 = smov [#allocation4]  }
  0xd4   :  { %s207_s17 = sshll.u32 %s308_s16, 4  ;;  %s208_s17 = int_to_ptr.vmem [resolvable:$true] %s207_s17 }
  0xd5   :  { %s281_s18 = scalar_lea.vmem %s208_s17, 32  ;;  %p286_p6 = scmp.lt.s32.totalorder %s208_s17, %s208_s17 }
  0xd6   :  { %p282_p5 = scmp.ne.s32.totalorder %s208_s17, %s281_s18  ;;  %p287_p7 = scmp.lt.s32.totalorder %s281_s18, %s281_s18 }
  0xd8   :  { %p288_p8 = por %p287_p7, %p286_p6 }
  0xda   :  { %p289_p9 = pnand %p288_p8, %p282_p5 }
 0x190   :  { %v185_v16 = vpop.f32.mrf.mxu1 }
 0x191   :  { %190 = vst.msk [vmem:[#allocation4] sm:$0x3] %vm189_vm4, %v185_v16 }
 0x192   :  { %v256_v17 = vpop.f32.mrf.mxu1 }
 0x193   :  { %292 = shalt.err (!%p289_p9)
}
 0x194   :  { %210 = dma.vmem_to_hbm [thread:$0]  %s208_s17, 32, %s383_s5, [#allocation5]  }
 0x195   :  { %301 = dma.done.wait [#allocation3], 32  }
 0x196   :  { %302 = vsyncadd [#allocation3], 4294967264 }
 0x197   :  { %303 = dma.done.wait [#allocation5], 32  }
 0x198   :  { %304 = vsyncadd [#allocation5], 4294967264 }
 0x199   :  { %217 = vsyncpa [#allocation3], 1 }
 0x19a   :  { %218 = vsyncpa [#allocation5], 1 }

</bundles_post_ra>
